<compile_context>
chip_gen: v7x
topology: tpu7x:2x2x1
jax: 0.10.0
libtpu: 0.0.40
codegen_flags: <defaults>
</compile_context>

<pallas_src>
import numpy as np
import jax
import jax.numpy as jnp
from jax.experimental import pallas as pl
from jax.experimental.pallas import tpu as pltpu


def _fdm_kernel(w_ref, b_ref, m_ref, q_ref, bg_ref, v_ref, pv_ref, gt_ref):
    """One (batch, lane-tile) block.

    w_ref : (C, C)  bf16   fdm 1x1-conv weight (constant across the grid)
    b_ref : (C, 1)  f32    fdm bias
    m_ref : (1, 1, TN) f32 patch mask, 1 = masked patch (exactly 0/1)
    q_ref, bg_ref : (1, C, TN) feature dtype (e.g. bf16)
    v/pv/gt_ref   : (1, C, TN) feature dtype
    """
    m = m_ref[0]                                   # (1, TN) f32, values {0,1}
    q = q_ref[0]                                   # (C, TN) feat dtype
    bg = bg_ref[0]

    # Blend bg*(1-m) + q*m: since m is exactly 0/1 this is a select (exact,
    # stays in the feature dtype, no per-chunk re-broadcast of (1-m)).
    masked = m > 0.5                               # (1, TN) bool, broadcasts over C
    qv = jnp.where(masked, q, bg)                  # (C, TN) feat dtype

    # TODO(synk): real self.fdm is instantiate_from_config; stand-in is a
    # deterministic 1x1 conv (CxC matmul) + tanh, gated to masked patches.
    # bf16 MXU operands + f32 accumulate per perf review.
    pv = jnp.tanh(
        jnp.dot(w_ref[...], qv.astype(w_ref.dtype),
                preferred_element_type=jnp.float32)
        + b_ref[...]) * m                          # (C, TN) f32

    qv32 = qv.astype(jnp.float32)
    v_ref[0] = (qv32 + pv).astype(v_ref.dtype)                     # repaired feature
    pv_ref[0] = pv.astype(pv_ref.dtype)                            # lost_feature
    gt_ref[0] = ((bg.astype(jnp.float32) - q.astype(jnp.float32)) * m
                 ).astype(gt_ref.dtype)                            # gt_feature


def _pick_tile(hw, cap):
    """Largest multiple-of-128 divisor of hw that is <= cap; else whole row."""
    if hw % 128 == 0:
        best = 0
        t = 128
        limit = min(hw, cap)
        while t <= limit:
            if hw % t == 0:
                best = t
            t += 128
        if best:
            return best
    return hw  # single (possibly lane-masked) block per batch row


def inpainting_fdm_forward(mask, quant_feat, bg_feat, w_fdm, b_fdm, stride):
    """mask: (B,1,H,W) float, 0 = masked pixel, 1 = unmasked.
    quant_feat / bg_feat: (B,C,h,w) with h = H//stride (kept in their own dtype).
    Returns (repaired_feature, lost_feature, gt_feature, masked_patch_idx)."""
    B, _, H, W = mask.shape
    Bf, C, h, w = quant_feat.shape
    assert H == W, "Height and width must be the same"
    assert Bf == B and H // stride == h and W // stride == w
    hw = h * w
    feat_dtype = quant_feat.dtype

    # ---- get_masked_patch_index: fused window-mean + threshold (one pass
    # over the pixel mask; exactly the reference `mean < 1` semantics). ----
    mpool = mask.astype(jnp.float32).reshape(B, 1, h, stride, w, stride)
    mpool = jnp.mean(mpool, axis=(3, 5))                 # (B,1,h,w) patch mean
    mpi = (mpool < 1.0).astype(jnp.float32)              # 1 = masked patch
    m_flat = mpi.reshape(B, 1, hw)

    # ---- features stay in the caller's layout: (B,C,h,w) -> (B,C,hw) is a
    # free reshape (no transpose, no pad, no dtype up-cast). ----
    q_flat = quant_feat.reshape(B, C, hw)
    bg_flat = bg_feat.reshape(B, C, hw)

    w_bf16 = w_fdm.astype(jnp.bfloat16)                  # tiny; MXU operand dtype
    b_col = b_fdm.reshape(C, 1).astype(jnp.float32)

    # ---- lane-tile sizing from a VMEM budget (double-buffered 2 inputs +
    # 3 outputs), kept under the 32 MiB scoped default on all generations. ----
    itemsize = jnp.dtype(feat_dtype).itemsize
    vmem_budget = 16 * 1024 * 1024
    tn_cap = max(128, (vmem_budget // (2 * 5 * C * itemsize)) // 128 * 128)
    TN = _pick_tile(hw, tn_cap)
    grid = (B, hw // TN)

    const_w_spec = pl.BlockSpec((C, C), lambda b, j: (0, 0))
    const_b_spec = pl.BlockSpec((C, 1), lambda b, j: (0, 0))
    m_spec = pl.BlockSpec((1, 1, TN), lambda b, j: (b, 0, j))
    feat_spec = pl.BlockSpec((1, C, TN), lambda b, j: (b, 0, j))

    out_shapes = (
        jax.ShapeDtypeStruct((B, C, hw), feat_dtype),   # v  (repaired feature)
        jax.ShapeDtypeStruct((B, C, hw), feat_dtype),   # pv (lost_feature)
        jax.ShapeDtypeStruct((B, C, hw), feat_dtype),   # gt_feature
    )

    N = B * hw
    cost = pl.CostEstimate(
        flops=int(2 * C * C * N + 7 * C * N),
        transcendentals=int(C * N),
        bytes_accessed=int(5 * C * N * itemsize + 4 * N + C * C * 2 + C * 4),
    )

    v, pv, gt = pl.pallas_call(
        _fdm_kernel,
        out_shape=out_shapes,
        grid=grid,
        in_specs=[const_w_spec, const_b_spec, m_spec, feat_spec, feat_spec],
        out_specs=[feat_spec, feat_spec, feat_spec],
        compiler_params=pltpu.CompilerParams(
            dimension_semantics=("parallel", "parallel")),
        cost_estimate=cost,
    )(w_bf16, b_col, m_flat, q_flat, bg_flat)

    # free reshapes back to the caller's layout
    return (v.reshape(B, C, h, w), pv.reshape(B, C, h, w),
            gt.reshape(B, C, h, w), mpi)


def _reference(mask, q, bg, wt, b, stride):
    q = q.astype(jnp.float32)
    bg = bg.astype(jnp.float32)
    wt = wt.astype(jnp.float32)
    b = b.astype(jnp.float32)
    B, _, H, W = mask.shape
    pn = H // stride
    mp = mask.astype(jnp.float32).reshape(B, 1, pn, stride, pn, stride).mean(axis=(3, 5))
    m = (mp < 1.0).astype(jnp.float32)
    qv = bg * (1.0 - m) + q * m
    pv = jnp.tanh(jnp.einsum('oc,bchw->bohw', wt, qv) + b.reshape(1, -1, 1, 1)) * m
    return qv + pv, pv, (bg - q) * m, m


if __name__ == "__main__":
    key = jax.random.PRNGKey(0)
    B, C, H, W, stride = 2, 32, 32, 32, 2
    h = w = H // stride          # 16 -> hw = 256 (multiple of 128: lane-dense)

    k1, k2, k3, k4 = jax.random.split(key, 4)
    quant_feat = jax.random.normal(k1, (B, C, h, w), jnp.float32).astype(jnp.bfloat16)
    bg_feat = jax.random.normal(k2, (B, C, h, w), jnp.float32).astype(jnp.bfloat16)
    w_fdm = 0.1 * jax.random.normal(k3, (C, C), jnp.float32)
    b_fdm = 0.1 * jax.random.normal(k4, (C,), jnp.float32)

    # pixel mask: 0 = masked (a hole), 1 = unmasked
    mask = jnp.ones((B, 1, H, W), jnp.float32)
    mask = mask.at[:, :, 8:24, 10:26].set(0.0)

    v, pv, gt, mpi = inpainting_fdm_forward(
        mask, quant_feat, bg_feat, w_fdm, b_fdm, stride)
    jax.block_until_ready((v, pv, gt, mpi))

    # TODO(synk): self.loss is instantiate_from_config; MSE stand-in only.
    loss = jnp.mean((gt.astype(jnp.float32) - pv.astype(jnp.float32)) ** 2)
    jax.block_until_ready(loss)

    rv, rpv, rgt, rmpi = _reference(mask, quant_feat, bg_feat, w_fdm, b_fdm, stride)

    def f32np(x):
        return np.asarray(x.astype(jnp.float32))

    # bf16 HBM I/O + bf16 MXU operands -> loosen tolerances vs. f32 reference
    np.testing.assert_allclose(f32np(v), f32np(rv), atol=5e-2, rtol=5e-2)
    np.testing.assert_allclose(f32np(pv), f32np(rpv), atol=5e-2, rtol=5e-2)
    np.testing.assert_allclose(f32np(gt), f32np(rgt), atol=5e-2, rtol=5e-2)
    np.testing.assert_allclose(np.asarray(mpi), np.asarray(rmpi), atol=1e-6, rtol=1e-6)

    print("KERNEL_OK")
</pallas_src>

<mosaic_0001>
module attributes {stable_mosaic.version = 11 : i64} {
  func.func @_fdm_kernel(%arg0: i32, %arg1: i32, %arg2: memref<32x32xbf16, #tpu.memory_space<vmem>>, %arg3: memref<32x1xf32, #tpu.memory_space<vmem>>, %arg4: memref<1x1x256xf32, #tpu.memory_space<vmem>>, %arg5: memref<1x32x256xbf16, #tpu.memory_space<vmem>>, %arg6: memref<1x32x256xbf16, #tpu.memory_space<vmem>>, %arg7: memref<1x32x256xbf16, #tpu.memory_space<vmem>>, %arg8: memref<1x32x256xbf16, #tpu.memory_space<vmem>>, %arg9: memref<1x32x256xbf16, #tpu.memory_space<vmem>>) attributes {dimension_semantics = [#tpu.dimension_semantics<parallel>, #tpu.dimension_semantics<parallel>], iteration_bounds = array<i64: 2, 1>, scalar_prefetch = 0 : i64, scratch_operands = 0 : i64, tpu.core_type = #tpu.core_type<tc>, window_params = [{pipeline_mode = #tpu.pipeline_mode<synchronous>, transform_indices = @transform_0, window_bounds = array<i64: 32, 32>}, {pipeline_mode = #tpu.pipeline_mode<synchronous>, transform_indices = @transform_1, window_bounds = array<i64: 32, 1>}, {transform_indices = @transform_2, window_bounds = array<i64: 1, 1, 256>}, {transform_indices = @transform_3, window_bounds = array<i64: 1, 32, 256>}, {transform_indices = @transform_4, window_bounds = array<i64: 1, 32, 256>}, {transform_indices = @transform_5, window_bounds = array<i64: 1, 32, 256>}, {transform_indices = @transform_6, window_bounds = array<i64: 1, 32, 256>}, {transform_indices = @transform_7, window_bounds = array<i64: 1, 32, 256>}]} {
    %c0 = arith.constant 0 : index
    %c0_0 = arith.constant 0 : index
    %c0_1 = arith.constant 0 : index
    %0 = vector.load %arg4[%c0, %c0_0, %c0_1] : memref<1x1x256xf32, #tpu.memory_space<vmem>>, vector<1x1x256xf32>
    %1 = vector.shape_cast %0 : vector<1x1x256xf32> to vector<1x256xf32>
    %c0_2 = arith.constant 0 : index
    %c0_3 = arith.constant 0 : index
    %c0_4 = arith.constant 0 : index
    %2 = vector.load %arg5[%c0_2, %c0_3, %c0_4] : memref<1x32x256xbf16, #tpu.memory_space<vmem>>, vector<1x32x256xbf16>
    %3 = vector.shape_cast %2 : vector<1x32x256xbf16> to vector<32x256xbf16>
    %c0_5 = arith.constant 0 : index
    %c0_6 = arith.constant 0 : index
    %c0_7 = arith.constant 0 : index
    %4 = vector.load %arg6[%c0_5, %c0_6, %c0_7] : memref<1x32x256xbf16, #tpu.memory_space<vmem>>, vector<1x32x256xbf16>
    %5 = vector.shape_cast %4 : vector<1x32x256xbf16> to vector<32x256xbf16>
    %cst = arith.constant 5.000000e-01 : f32
    %6 = vector.broadcast %cst : f32 to vector<1x256xf32>
    %7 = arith.cmpf ogt, %1, %6 : vector<1x256xf32>
    %8 = vector.shape_cast %7 : vector<1x256xi1> to vector<1x256xi1>
    %9 = vector.broadcast %8 : vector<1x256xi1> to vector<32x256xi1>
    %10 = arith.select %9, %3, %5 : vector<32x256xi1>, vector<32x256xbf16>
    %c0_8 = arith.constant 0 : index
    %c0_9 = arith.constant 0 : index
    %11 = vector.load %arg2[%c0_8, %c0_9] : memref<32x32xbf16, #tpu.memory_space<vmem>>, vector<32x32xbf16>
    %cst_10 = arith.constant dense<0.000000e+00> : vector<32x256xf32>
    %12 = tpu.matmul %11, %10, %cst_10 {dimension_numbers = #tpu.dot_dimension_numbers<[1], [0], [0], [1], [0, 0, 1, 1], [], []>} : vector<32x32xbf16>, vector<32x256xbf16>, vector<32x256xf32> -> vector<32x256xf32>
    %c0_11 = arith.constant 0 : index
    %c0_12 = arith.constant 0 : index
    %13 = vector.load %arg3[%c0_11, %c0_12] : memref<32x1xf32, #tpu.memory_space<vmem>>, vector<32x1xf32>
    %14 = vector.broadcast %13 : vector<32x1xf32> to vector<32x256xf32>
    %15 = arith.addf %12, %14 : vector<32x256xf32>
    %16 = math.tanh %15 : vector<32x256xf32>
    %17 = vector.broadcast %1 : vector<1x256xf32> to vector<32x256xf32>
    %18 = arith.mulf %16, %17 : vector<32x256xf32>
    %19 = arith.extf %10 : vector<32x256xbf16> to vector<32x256xf32>
    %20 = arith.addf %19, %18 : vector<32x256xf32>
    %21 = arith.truncf %20 : vector<32x256xf32> to vector<32x256xbf16>
    %c0_13 = arith.constant 0 : index
    %c0_14 = arith.constant 0 : index
    %c0_15 = arith.constant 0 : index
    %22 = vector.load %arg7[%c0_13, %c0_14, %c0_15] : memref<1x32x256xbf16, #tpu.memory_space<vmem>>, vector<1x32x256xbf16>
    %23 = vector.shape_cast %22 : vector<1x32x256xbf16> to vector<32x256xbf16>
    %24 = vector.shape_cast %21 : vector<32x256xbf16> to vector<1x32x256xbf16>
    tpu.vector_store %arg7[%c0_13, %c0_14, %c0_15], %24 {strides = array<i32>} : memref<1x32x256xbf16, #tpu.memory_space<vmem>>, vector<1x32x256xbf16>,
    %25 = arith.truncf %18 : vector<32x256xf32> to vector<32x256xbf16>
    %c0_16 = arith.constant 0 : index
    %c0_17 = arith.constant 0 : index
    %c0_18 = arith.constant 0 : index
    %26 = vector.load %arg8[%c0_16, %c0_17, %c0_18] : memref<1x32x256xbf16, #tpu.memory_space<vmem>>, vector<1x32x256xbf16>
    %27 = vector.shape_cast %26 : vector<1x32x256xbf16> to vector<32x256xbf16>
    %28 = vector.shape_cast %25 : vector<32x256xbf16> to vector<1x32x256xbf16>
    tpu.vector_store %arg8[%c0_16, %c0_17, %c0_18], %28 {strides = array<i32>} : memref<1x32x256xbf16, #tpu.memory_space<vmem>>, vector<1x32x256xbf16>,
    %29 = arith.extf %5 : vector<32x256xbf16> to vector<32x256xf32>
    %30 = arith.extf %3 : vector<32x256xbf16> to vector<32x256xf32>
    %31 = arith.subf %29, %30 : vector<32x256xf32>
    %32 = vector.broadcast %1 : vector<1x256xf32> to vector<32x256xf32>
    %33 = arith.mulf %31, %32 : vector<32x256xf32>
    %34 = arith.truncf %33 : vector<32x256xf32> to vector<32x256xbf16>
    %c0_19 = arith.constant 0 : index
    %c0_20 = arith.constant 0 : index
    %c0_21 = arith.constant 0 : index
    %35 = vector.load %arg9[%c0_19, %c0_20, %c0_21] : memref<1x32x256xbf16, #tpu.memory_space<vmem>>, vector<1x32x256xbf16>
    %36 = vector.shape_cast %35 : vector<1x32x256xbf16> to vector<32x256xbf16>
    %37 = vector.shape_cast %34 : vector<32x256xbf16> to vector<1x32x256xbf16>
    tpu.vector_store %arg9[%c0_19, %c0_20, %c0_21], %37 {strides = array<i32>} : memref<1x32x256xbf16, #tpu.memory_space<vmem>>, vector<1x32x256xbf16>,
    return
  }
  func.func @transform_0(%arg0: i32, %arg1: i32) -> (i32, i32) {
    %c0_i32 = arith.constant 0 : i32
    %c0_i32_0 = arith.constant 0 : i32
    %c0_i32_1 = arith.constant 0 : i32
    return %c0_i32, %c0_i32_0 : i32, i32
  }
  func.func @transform_1(%arg0: i32, %arg1: i32) -> (i32, i32) {
    %c0_i32 = arith.constant 0 : i32
    %c0_i32_0 = arith.constant 0 : i32
    %c0_i32_1 = arith.constant 0 : i32
    return %c0_i32, %c0_i32_0 : i32, i32
  }
  func.func @transform_2(%arg0: i32, %arg1: i32) -> (i32, i32, i32) {
    %c0_i32 = arith.constant 0 : i32
    %c0_i32_0 = arith.constant 0 : i32
    return %arg0, %c0_i32, %arg1 : i32, i32, i32
  }
  func.func @transform_3(%arg0: i32, %arg1: i32) -> (i32, i32, i32) {
    %c0_i32 = arith.constant 0 : i32
    %c0_i32_0 = arith.constant 0 : i32
    return %arg0, %c0_i32, %arg1 : i32, i32, i32
  }
  func.func @transform_4(%arg0: i32, %arg1: i32) -> (i32, i32, i32) {
    %c0_i32 = arith.constant 0 : i32
    %c0_i32_0 = arith.constant 0 : i32
    return %arg0, %c0_i32, %arg1 : i32, i32, i32
  }
  func.func @transform_5(%arg0: i32, %arg1: i32) -> (i32, i32, i32) {
    %c0_i32 = arith.constant 0 : i32
    %c0_i32_0 = arith.constant 0 : i32
    return %arg0, %c0_i32, %arg1 : i32, i32, i32
  }
  func.func @transform_6(%arg0: i32, %arg1: i32) -> (i32, i32, i32) {
    %c0_i32 = arith.constant 0 : i32
    %c0_i32_0 = arith.constant 0 : i32
    return %arg0, %c0_i32, %arg1 : i32, i32, i32
  }
  func.func @transform_7(%arg0: i32, %arg1: i32) -> (i32, i32, i32) {
    %c0_i32 = arith.constant 0 : i32
    %c0_i32_0 = arith.constant 0 : i32
    return %arg0, %c0_i32, %arg1 : i32, i32, i32
  }
}

</mosaic_0001>

<bundles_post_ra>
// kernel: tpu_custom_call.1
= control target key start
LH: loop header
LB: loop body
LE: loop exit
PB: predicated region body
PF: predicated region fallthrough
CT: control target
= control target key end

     0   :  { %s1842_s0 = inlined_call_operand.vmem [shape: bf16[32,32], index: 0, kind: input, shape index: {}]   ;;  %s1843_s1 = inlined_call_operand.vmem [shape: f32[32,1], index: 1, kind: input, shape index: {}]   ;;  %s1844_s2 = inlined_call_operand.vmem [shape: f32[2,1,256], index: 2, kind: input, shape index: {}]   ;;  %s1845_s3 = inlined_call_operand.hbm [shape: bf16[2,32,256], index: 3, kind: input, shape index: {}]   ;;  %s1846_s4 = inlined_call_operand.hbm [shape: bf16[2,32,256], index: 4, kind: input, shape index: {}]   ;;  %s1847_s5 = inlined_call_operand.hbm [shape: bf16[2,32,256], index: 5, kind: output, shape index: {0}]   ;;  %s1848_s6 = inlined_call_operand.hbm [shape: bf16[2,32,256], index: 6, kind: output, shape index: {1}]   ;;  %s1849_s7 = inlined_call_operand.hbm [shape: bf16[2,32,256], index: 7, kind: output, shape index: {2}]  }
   0x1   :  { %1858 = sst [smem:[#allocation18_spill]] %s1845_s3 }
   0x2   :  { %13 = vsyncpa [#allocation3], 0 }
   0x3   :  { %15 = vsyncpa [#allocation3 + $0x1], 0 }
   0x4   :  { %16 = vsyncpa [#allocation6], 0 }
   0x5   :  { %18 = vsyncpa [#allocation6 + $0x1], 0 }
   0x6   :  { %19 = vsyncpa [#allocation4], 0 }
   0x7   :  { %21 = vsyncpa [#allocation4 + $0x1], 0 }
   0x8   :  { %22 = vsyncpa [#allocation9], 0 }
   0x9   :  { %24 = vsyncpa [#allocation9 + $0x1], 0  ;;  %s1409_s24 = smov 0   ;;  %s1411_s25 = smov 0  }
   0xa   :  { %s1413_s26 = smov 0   ;;  %s1415_s27 = smov 0  }
   0xb   :  { %s1417_s28 = smov 0   ;;  %s1419_s29 = smov 0  }
   0xc LB: > { %1859 = sst [smem:[#allocation15_spill]] %s1345_s26  ;;  %s1440_s30 = sadd.s32 4294967295, %s1357_s29   ;;  %s1357_s29 = sphi %s1419_s29, %s30_s29   ;;  %s1353_s28 = sphi %s1417_s28, %s1887_s28   ;;  %s1349_s27 = sphi %s1415_s27, %s1886_s27   ;;  %s1345_s26 = sphi %s1413_s26, %s1882_s26   ;;  %s1341_s25 = sphi %s1411_s25, %s1885_s25   ;;  %s1337_s24 = sphi %s1409_s24, %s1884_s24  }
   0xd   : > { %s1850_s8 = sadd.s32 4294967294, %s1357_s29   ;;  %s42_s9 = sadd.s32 1, %s1353_s28 }
   0xe   : > { %s121_s10 = sadd.s32 1, %s1345_s26  ;;  %p44_p0 = scmp.ge.s32.totalorder %s42_s9, 2 }
   0xf   : > { %p128_p1 = scmp.ne.s32.totalorder %s1345_s26, %s1341_s25  ;;  %p129_p2 = scmp.eq.s32.totalorder %s1357_s29, 0 }
  0x10   : > { %p134_p3 = scmp.ne.s32.totalorder %s1341_s25, %s1337_s24  ;;  %s1889_s9 = smov (%p44_p0, %s42_s9), 0 }
  0x11   : > { %1860 = sst [smem:[#allocation16_spill]] %s1889_s9  ;;  %p1452_p4 = por %p129_p2, %p128_p1 }
  0x12   : > { %p135_p5 = scmp.eq.s32.totalorder %s1440_s30, 0  ;;  %s116_s12 = ssub.s32 %s1353_s28, %s1889_s9 }
  0x13   : > { %p188_p6 = scmp.eq.s32.totalorder %s1440_s30, 1  ;;  %p119_p7 = scmp.eq.s32.totalorder %s116_s12, 0 }
  0x14   : > { %p1460_p8 = por %p135_p5, %p134_p3  ;;  %p194_p10 = scmp.eq.s32.totalorder %s1850_s8, 1 }
  0x15   : > { %p1464_p9 = por %p188_p6, %p128_p1  ;;  %p1076_p13 = scmp.lt.s32.totalorder %s1357_s29, 2 }
  0x16   : > { %s1862_s13 = scalar_select %p1460_p8, 1, 0 }
  0x17   : > { %s1863_s14 = scalar_select %p1464_p9, 1, 0 }
  0x18   : > { %s1471_s15 = scalar_select %p119_p7, %s1345_s26, %s121_s10  }
  0x19   : > { %p1473_p11 = por %p194_p10, %p134_p3  ;;  %s1480_s17 = sand.u32 1, %s1345_s26  }
  0x1a   : > { %1864 = sst [smem:[#allocation17_spill]] %s1471_s15  ;;  %s1851_s18 = sshll.u32 %s1480_s17, 5 }
  0x1b   : > { %s1865_s16 = scalar_select %p1473_p11, 1, 0 }
  0x1c   : > { %s1852_s19 = sshll.u32 %s1353_s28, 9  ;;  %s1866_s3 = sld [smem:[#allocation18_spill]] }
  0x1d   : > { %s292_s23 = scalar_lea.vmem [#allocation2], %s1851_s18  ;;  %p1497_p0 = pnand %p1076_p13, %p1452_p4 }
  0x1e   : > { %s301_s10 = sshll.u32 %s292_s23, 4  ;;  %s1493_s10 = int_to_ptr.vmem [resolvable:$true] %s301_s10 }
  0x1f   : > { %p1153_p3 = pneg %p1497_p0 }
  0x22   : > { %s1489_s22 = scalar_lea.hbm %s1866_s3, %s1852_s19  ;;  %s1156_s11 = scalar_lea.hbm %s1866_s3, 1024 }
  0x23   : > { %s1151_s21 = scalar_lea.hbm %s1489_s22, 512  ;;  %p1157_p4 = scmp.lt.u32.totalorder %s1489_s22, %s1866_s3 }
  0x24   : > { %p1152_p2 = scmp.ne.s32.totalorder %s1489_s22, %s1151_s21  ;;  %p1158_p7 = scmp.lt.u32.totalorder %s1156_s11, %s1151_s21 }
  0x25   : > { %p1160_p13 = scmp.lt.u32.totalorder %s1151_s21, %s1489_s22 }
  0x26   : > { %p1154_p5 = pnand %p1153_p3, %p1152_p2  ;;  %p1159_p10 = por %p1158_p7, %p1157_p4 }
  0x28   : > { %p1155_p6 = pneg %p1154_p5  ;;  %p1161_p12 = por %p1160_p13, %p1159_p10 }
  0x2a   : > { %p1162_p1 = pnand %p1161_p12, %p1155_p6 }
  0x2c   : > { %1165 = shalt.err (!%p1162_p1)
}
  0x2d   : > { %s1166_s20 = scalar_lea.vmem %s1493_s10, 512  ;;  %s1359_s8 = smov [#allocation2]  }
  0x2e   : > { %p1167_p2 = scmp.ne.s32.totalorder %s1493_s10, %s1166_s20  ;;  %s1171_s23 = sshll.u32 %s1359_s8, 4  ;;  %s1172_s23 = int_to_ptr.vmem [resolvable:$false] %s1171_s23 }
  0x2f   : > { %s1173_s18 = scalar_lea.vmem %s1172_s23, 1024  ;;  %p1174_p9 = scmp.lt.s32.totalorder %s1493_s10, %s1172_s23 }
  0x30   : > { %p1169_p5 = pnand %p1167_p2, %p1153_p3  ;;  %p1175_p4 = scmp.lt.s32.totalorder %s1173_s18, %s1166_s20 }
  0x32   : > { %p1170_p11 = pneg %p1169_p5  ;;  %p1176_p7 = por %p1175_p4, %p1174_p9 }
  0x34   : > { %p1177_p10 = pnand %p1176_p7, %p1170_p11 }
  0x36   : > { %1180 = shalt.err (!%p1177_p10)
}
  0x37   : > { %s1856_s19 = smov 128   ;;  %s1361_s21 = smov 8  }
  0x38   : > { %s1868_s20 = scalar_lea.sflag [#allocation3], %s1480_s17  ;;  %p332_p9 = scmp.lt.s32.totalorder %s1357_s29, 3 }
  0x39   : > { %1062 = dma.hbm_to_vmem [thread:$0]  (!%p1497_p0), %s1489_s22, 512, %s1493_s10, %s1868_s20, %s1856_s19, %s1856_s19, %s1361_s21  }
  0x3a   : > { %s1869_s11 = sshll.u32 %s1353_s28, 9  ;;  %p1870_p11 = scmp.ge.s32.totalorder %s1357_s29, 1 }
  0x3b   : > { %s1539_s18 = scalar_lea.hbm %s1846_s4, %s1869_s11  ;;  %s1872_s9 = sshll.u32 %s1480_s17, 5 }
  0x3c   : > { %p1543_p12 = pnand %p1870_p11, %p332_p9  ;;  %s315_s15 = scalar_lea.vmem [#allocation5], %s1872_s9 }
  0x3d   : > { %s324_s26 = sshll.u32 %s315_s15, 4  ;;  %s312_s22 = scalar_lea.sflag [#allocation6], %s1480_s17  ;;  %s1549_s26 = int_to_ptr.vmem [resolvable:$true] %s324_s26 }
  0x3e   : > { %s1181_s10 = scalar_lea.hbm %s1539_s18, 512  ;;  %s1186_s8 = scalar_lea.hbm %s1846_s4, 1024 }
  0x3f   : > { %p1182_p1 = scmp.ne.s32.totalorder %s1539_s18, %s1181_s10  ;;  %p1187_p2 = scmp.lt.u32.totalorder %s1539_s18, %s1846_s4 }
  0x40   : > { %p1188_p5 = scmp.lt.u32.totalorder %s1186_s8, %s1181_s10  ;;  %p1190_p7 = scmp.lt.u32.totalorder %s1181_s10, %s1539_s18 }
  0x41   : > { %p1184_p6 = pnand %p1182_p1, %p1153_p3 }
  0x42   : > { %p1189_p4 = por %p1188_p5, %p1187_p2 }
  0x43   : > { %p1185_p13 = pneg %p1184_p6 }
  0x44   : > { %p1191_p10 = por %p1190_p7, %p1189_p4 }
  0x46   : > { %p1192_p9 = pnand %p1191_p10, %p1185_p13 }
  0x48   : > { %1195 = shalt.err (!%p1192_p9)
}
  0x49   : > { %s1196_s9 = scalar_lea.vmem %s1549_s26, 512  ;;  %s1362_s15 = smov [#allocation5]  }
  0x4a   : > { %p1197_p11 = scmp.ne.s32.totalorder %s1549_s26, %s1196_s9  ;;  %s1201_s20 = sshll.u32 %s1362_s15, 4  ;;  %s1202_s20 = int_to_ptr.vmem [resolvable:$false] %s1201_s20 }
  0x4b   : > { %s1203_s19 = scalar_lea.vmem %s1202_s20, 1024  ;;  %p1204_p8 = scmp.lt.s32.totalorder %s1549_s26, %s1202_s20 }
  0x4c   : > { %p1199_p1 = pnand %p1197_p11, %p1153_p3  ;;  %p1205_p2 = scmp.lt.s32.totalorder %s1203_s19, %s1196_s9 }
  0x4e   : > { %p1200_p6 = pneg %p1199_p1  ;;  %p1206_p5 = por %p1205_p2, %p1204_p8 }
  0x50   : > { %p1207_p4 = pnand %p1206_p5, %p1200_p6 }
  0x52   : > { %1210 = shalt.err (!%p1207_p4)
}
  0x53   : > { %s1873_s10 = smov 128   ;;  %336 = sbr.rel (%p1543_p12) target bundleno = 419 (0x1a3), region = 40 }
  0x54   : > { %1065 = dma.hbm_to_vmem [thread:$0]  (!%p1497_p0), %s1539_s18, 512, %s1549_s26, %s312_s22, %s1873_s10, %s1873_s10, %s1361_s21  }
  0x55   : > { %s1583_s11 = sand.u32 (!%p1543_p12), 1, %s1341_s25   ;;  %p1874_p8 = scmp.ne.s32.totalorder (!%p1543_p12), %s1862_s13, 0 }
  0x56   : > { %s1586_s8 = sshll.u32 (!%p1543_p12), %s1583_s11, 5  ;;  %s339_s12 = scalar_lea.sflag (!%p1543_p12), [#allocation3], %s1583_s11 }
  0x57   : > { %s1590_s23 = scalar_lea.vmem (!%p1543_p12), [#allocation2], %s1586_s8 }
  0x5a   : > { %1320 = dma.done.wait (%p1874_p8), %s339_s12, 512  }
  0x5b   : > { %1322 = vsyncadd (%p1874_p8), %s339_s12, 4294966784  ;;  %s348_s3 = scalar_lea.sflag [#allocation6], %s1583_s11  ;;  %s1598_s26 = scalar_lea.vmem [#allocation5], %s1586_s8 }
  0x5c   : > { %1324 = dma.done.wait (%p1874_p8), %s348_s3, 512  }
  0x5d   : > { %1326 = vsyncadd (%p1874_p8), %s348_s3, 4294966784  ;;  %p406_p0 = scmp.lt.s32.totalorder %s1349_s27, 1  ;;  %v431_v0 = vlaneseq  ;;  %v1363_v1 = vmov 0   ;;  %v421_v6 = vld [vmem:[%s1590_s23] sm:$0xff]  ;;  %v426_v8 = vld [vmem:[%s1598_s26 + $0x8] sm:$0xff]  ;;  %vm504_vm4 = vcmask 261120  }
  0x5e   : > { %543 = vmatprep.mubr.bf16.mxu0 %v1363_v1  ;;  %553 = vmatprep.mubr.bf16.mxu1 %v1363_v1  ;;  %v425_v7 = vld [vmem:[%s1598_s26] sm:$0xff]  ;;  %v671_v9 = vunpack.c.l.bf16 %v421_v6  ;;  %v665_v13 = vunpack.c.l.bf16 %v426_v8  ;;  %v422_v14 = vld [vmem:[%s1590_s23 + $0x8] sm:$0xff]  ;;  %v666_v17 = vunpack.c.h.bf16 %v426_v8  ;;  %v672_v18 = vunpack.c.h.bf16 %v421_v6  ;;  %v423_v23 = vld [vmem:[%s1590_s23 + $0x10] sm:$0xff]  ;;  %s1698_s9 = sshll.u32 %s1349_s27, 9  ;;  %s397_s15 = scalar_lea.vmem [#allocation8], %s1586_s8 }
  0x5f   : > { %s407_s17 = scalar_select %p406_p0, %s1349_s27, 1  ;;  %v432_v2 = vshrl.u32 %v431_v0, 7  ;;  %1132 = vset.pattern.permute.xlu1 %v1363_v1  ;;  %1131 = vset.pattern.permute.xlu0 %v1363_v1  ;;  %v663_v11 = vunpack.c.l.bf16 %v425_v7  ;;  %v664_v12 = vunpack.c.h.bf16 %v425_v7  ;;  %v673_v20 = vunpack.c.l.bf16 %v422_v14  ;;  %v427_v26 = vld [vmem:[%s1598_s26 + $0x10] sm:$0xff]  ;;  %v450_v28 = vld [vmem:[%s1843_s1] sm:$0xff]  ;;  %v424_v36 = vld [vmem:[%s1590_s23 + $0x18] sm:$0xff] }
  0x60   : > { %v674_v21 = vunpack.c.h.bf16 %v422_v14  ;;  %v452_v27 = vld [vmem:[%s1843_s1 + $0x10] sm:$0xff]  ;;  %456 = vperm.xlu0 %1131, %v450_v28   ;;  %v428_v37 = vld [vmem:[%s1598_s26 + $0x18] sm:$0xff]  ;;  %v451_v41 = vld [vmem:[%s1843_s1 + $0x8] sm:$0xff]  ;;  %v667_v45 = vunpack.c.l.bf16 %v427_v26  ;;  %v668_v48 = vunpack.c.h.bf16 %v427_v26  ;;  %s1662_s23 = scalar_lea.vmem [#allocation10], %s1586_s8  ;;  %v675_v53 = vunpack.c.l.bf16 %v423_v23  ;;  %s767_s20 = sshll.u32 %s397_s15, 4  ;;  %s1716_s20 = int_to_ptr.vmem [resolvable:$true] %s767_s20 }
  0x61   : > { %s996_s21 = sshll.u32 %s407_s17, 1  ;;  %v433_v3 = vsub.s32 0, %v432_v2  ;;  %v437_v4 = vsub.s32 1, %v432_v2  ;;  %v679_v22 = vsub.f32 %v663_v11, %v671_v9  ;;  %v680_v25 = vsub.f32 %v664_v12, %v672_v18  ;;  %466 = vperm.xlu1 %1132, %v452_v27   ;;  %v453_v40 = vld [vmem:[%s1843_s1 + $0x18] sm:$0xff]  ;;  %v1133_v62 = vld [vmem:[%s1842_s0] sm:$0xff]   ;;  %v1134_v63 = vld [vmem:[%s1842_s0 + $0x8] sm:$0xff]   ;;  %s1712_s3 = scalar_lea.hbm %s1848_s6, %s1698_s9 }
  0x62   : > { %s412_s13 = scalar_lea.vmem %s1844_s2, %s996_s21  ;;  %v681_v30 = vsub.f32 %v665_v13, %v673_v20  ;;  %v682_v31 = vsub.f32 %v666_v17, %v674_v21  ;;  %v669_v49 = vunpack.c.l.bf16 %v428_v37  ;;  %v670_v52 = vunpack.c.h.bf16 %v428_v37  ;;  %s785_s19 = sshll.u32 %s1662_s23, 4  ;;  %s1724_s19 = int_to_ptr.vmem [resolvable:$true] %s785_s19 }
  0x63   : > { %v420_v5 = vld [vmem:[%s412_s13] sm:$0x3]  ;;  %v676_v54 = vunpack.c.h.bf16 %v423_v23  ;;  %v677_v55 = vunpack.c.l.bf16 %v424_v36  ;;  %v678_v56 = vunpack.c.h.bf16 %v424_v36  ;;  %v683_v58 = vsub.f32 %v667_v45, %v675_v53  ;;  %s728_s13 = sand.u32 1, %s1440_s30   ;;  %s1705_s10 = scalar_lea.vmem [#allocation7], %s1586_s8 }
  0x64   : > { %vm429_vm0 = vcmp.gt.f32.partialorder %v420_v5, 0.5  ;;  %v1613_v19 = vrot.slane %v420_v5, %v433_v3  ;;  %v1616_v24 = vrot.slane %v420_v5, %v437_v4  ;;  %461 = vperm.xlu0 %1131, %v451_v41   ;;  %s749_s17 = sshll.u32 %s1705_s10, 4  ;;  %s1722_s26 = scalar_lea.hbm %s1849_s7, %s1698_s9  ;;  %s1732_s17 = int_to_ptr.vmem [resolvable:$true] %s749_s17 }
  0x65   : > { %v430_v10 = vsel %vm429_vm0, 1, %v1363_v1  ;;  %471 = vperm.xlu1 %1132, %v453_v40   ;;  %v684_v59 = vsub.f32 %v668_v48, %v676_v54  ;;  %v685_v60 = vsub.f32 %v669_v49, %v677_v55  ;;  %v686_v61 = vsub.f32 %v670_v52, %v678_v56  ;;  %s1730_s22 = scalar_lea.hbm %s1847_s5, %s1698_s9  ;;  %s1737_s27 = scalar_lea.sflag [#allocation9], %s728_s13 }
  0x66   : > { %v434_v15 = vrot.slane %v430_v10, %v433_v3  ;;  %v438_v16 = vrot.slane %v430_v10, %v437_v4  ;;  %v687_v32 = vmul.f32 %v679_v22, %v1613_v19  ;;  %v688_v35 = vmul.f32 %v680_v25, %v1616_v24  ;;  %s1211_s12 = scalar_lea.vmem %s1716_s20, 512  ;;  %p1877_p12 = scmp.ne.s32.totalorder %s1863_s14, 0 }
  0x67   : > { %v689_v42 = vmul.f32 %v681_v30, %v1613_v19  ;;  %v690_v43 = vmul.f32 %v682_v31, %v1616_v24  ;;  %v691_v0 = vmul.f32 %v683_v58, %v1613_v19  ;;  %v692_v1 = vmul.f32 %v684_v59, %v1616_v24  ;;  %p1212_p3 = scmp.ne.s32.totalorder %s1716_s20, %s1211_s12  ;;  %s1364_s8 = smov [#allocation8]  }
  0x68   : > { %vm439_vm1 = vcmp.eq.s32.totalorder %v434_v15, 1  ;;  %vm440_vm2 = vcmp.eq.s32.totalorder %v438_v16, 1  ;;  %v1038_v44 = vpack.c.bf16 %v688_v35, %v687_v32  ;;  %v693_v2 = vmul.f32 %v685_v60, %v1613_v19 }
  0x69   : > { %vm1625_vm3 = vmpackc.low %vm440_vm2, %vm439_vm1  ;;  %v1039_v50 = vpack.c.bf16 %v690_v43, %v689_v42  ;;  %v694_v3 = vmul.f32 %v686_v61, %v1616_v24  ;;  %v1040_v4 = vpack.c.bf16 %v692_v1, %v691_v0  ;;  %p1213_p13 = pnand %p1212_p3, %p1877_p12 }
  0x6a   : > { %v1632_v33 = vsel %vm1625_vm3, %v421_v6, %v425_v7  ;;  %v1636_v34 = vsel %vm1625_vm3, %v422_v14, %v426_v8  ;;  %v1645_v39 = vsel %vm1625_vm3, %v423_v23, %v427_v26  ;;  %v1659_v47 = vsel %vm1625_vm3, %v424_v36, %v428_v37  ;;  %719 = vst [vmem:[%s1662_s23] sm:$0xff] %v1038_v44 }
  0x6b   : > { %v1000_v38 = vcombine.high %v1632_v33, %v1636_v34  ;;  %v999_v46 = vcombine.low %v1632_v33, %v1636_v34  ;;  %v1002_v51 = vcombine.high %v1645_v39, %v1659_v47  ;;  %720 = vst [vmem:[%s1662_s23 + $0x8] sm:$0xff] %v1039_v50  ;;  %v1001_v57 = vcombine.low %v1645_v39, %v1659_v47  ;;  %p1214_p7 = pneg %p1213_p13 }
  0x6c   : > { %v1041_v5 = vpack.c.bf16 %v694_v3, %v693_v2  ;;  %721 = vst [vmem:[%s1662_s23 + $0x10] sm:$0xff] %v1040_v4  ;;  %v591_v28 = vunpack.c.l.bf16 %v1632_v33  ;;  %v595_v30 = vunpack.c.l.bf16 %v1645_v39  ;;  %v592_v32 = vunpack.c.h.bf16 %v1632_v33 }
  0x6d   : > { %511 = vmatprep.subr.bf16.mxu0 %v1000_v38  ;;  %1045 = vmatprep.subr.bf16.mxu1 %v1000_v38  ;;  %v596_v37 = vunpack.c.h.bf16 %v1645_v39  ;;  %v593_v41 = vunpack.c.l.bf16 %v1636_v34  ;;  %v597_v45 = vunpack.c.l.bf16 %v1659_v47  ;;  %v594_v39 = vunpack.c.h.bf16 %v1636_v34 }
  0x6e   : > { %512 = vmatpush1.bf16.msra.mxu0 %v999_v46  ;;  %1047 = vmatpush1.bf16.msra.mxu1 %v999_v46  ;;  %722 = vst [vmem:[%s1662_s23 + $0x18] sm:$0xff] %v1041_v5  ;;  %v598_v53 = vunpack.c.h.bf16 %v1659_v47  ;;  %s1215_s23 = sshll.u32 %s1364_s8, 4  ;;  %s1216_s23 = int_to_ptr.vmem [resolvable:$false] %s1215_s23 }
  0x6f   : > { %513 = vmatprep.subr.bf16.mxu0 %v1002_v51  ;;  %1046 = vmatprep.subr.bf16.mxu1 %v1002_v51  ;;  %p1218_p10 = scmp.lt.s32.totalorder %s1716_s20, %s1216_s23 }
  0x72   : > { %514 = vmatpush1.bf16.msra.mxu0 %v1001_v57  ;;  %1048 = vmatpush1.bf16.msra.mxu1 %v1001_v57 }
  0x75   : > { %1003 = vmatmul.mubr.msk.bf16.vlgmr.msra.gmra.mrb[0].mxu0 %vm504_vm4, %v1133_v62  ;;  %1004 = vmatmul.mubr.msk.bf16.vlgmr.msra.gmra.mrb[0].mxu1 %vm504_vm4, %v1134_v63 }
  0xdf   : > { %v457_v7 = vpop.permute.xlu0 %456 }
  0xe0   : > { %v467_v6 = vpop.permute.xlu1 %466 }
  0xe3   : > { %v462_v9 = vpop.permute.xlu0 %461 }
  0xe4   : > { %v472_v8 = vpop.permute.xlu1 %471 }
 0x148   : > { %v545_v10 = vpop.f32.mrb[0].mxu0  ;;  %v555_v11 = vpop.f32.mrb[0].mxu1 }
 0x149   : > { %v546_v12 = vadd.f32 %v545_v10, %v457_v7  ;;  %v556_v13 = vadd.f32 %v555_v11, %v467_v6  ;;  %v547_v14 = vpop.f32.mrb[1].mxu0  ;;  %v557_v15 = vpop.f32.mrb[1].mxu1 }
 0x14a   : > { %v548_v16 = vadd.f32 %v547_v14, %v457_v7  ;;  %v558_v17 = vadd.f32 %v557_v15, %v467_v6  ;;  %v549_v18 = vpop.f32.mrb[2].mxu0  ;;  %v559_v20 = vpop.f32.mrb[2].mxu1 }
 0x14b   : > { %1135 = vtanh.f32 %v546_v12  ;;  %v550_v21 = vadd.f32 %v549_v18, %v462_v9  ;;  %v551_v22 = vpop.f32.mrb[3].mxu0  ;;  %v561_v23 = vpop.f32.mrb[3].mxu1  ;;  %v560_v25 = vadd.f32 %v559_v20, %v472_v8 }
 0x14c   : > { %1137 = vtanh.f32 %v556_v13  ;;  %v552_v26 = vadd.f32 %v551_v22, %v462_v9  ;;  %v562_v27 = vadd.f32 %v561_v23, %v472_v8 }
 0x14d   : > { %1139 = vtanh.f32 %v548_v16 }
 0x14e   : > { %1141 = vtanh.f32 %v558_v17 }
 0x14f   : > { %1143 = vtanh.f32 %v550_v21 }
 0x150   : > { %1145 = vtanh.f32 %v560_v25 }
 0x151   : > { %1147 = vtanh.f32 %v552_v26 }
 0x152   : > { %1149 = vtanh.f32 %v562_v27 }
 0x155   : > { %v1136_v29 = vpop.eup %1135 }
 0x156   : > { %v1138_v31 = vpop.eup %1137  ;;  %v583_v35 = vmul.f32 %v1136_v29, %v1613_v19 }
 0x157   : > { %v1140_v36 = vpop.eup %1139  ;;  %v587_v38 = vmul.f32 %v1138_v31, %v1613_v19 }
 0x158   : > { %v1142_v40 = vpop.eup %1141  ;;  %v599_v42 = vadd.f32 %v591_v28, %v583_v35  ;;  %v584_v43 = vmul.f32 %v1140_v36, %v1616_v24 }
 0x159   : > { %v1144_v44 = vpop.eup %1143  ;;  %v603_v33 = vadd.f32 %v595_v30, %v587_v38  ;;  %v588_v46 = vmul.f32 %v1142_v40, %v1616_v24 }
 0x15a   : > { %v1146_v48 = vpop.eup %1145  ;;  %v600_v49 = vadd.f32 %v592_v32, %v584_v43  ;;  %v1034_v50 = vpack.c.bf16 %v584_v43, %v583_v35  ;;  %v585_v51 = vmul.f32 %v1144_v44, %v1613_v19 }
 0x15b   : > { %v1148_v52 = vpop.eup %1147  ;;  %v604_v54 = vadd.f32 %v596_v37, %v588_v46  ;;  %v1036_v55 = vpack.c.bf16 %v588_v46, %v587_v38  ;;  %v589_v56 = vmul.f32 %v1146_v48, %v1613_v19 }
 0x15c   : > { %v1150_v57 = vpop.eup %1149  ;;  %v1030_v58 = vpack.c.bf16 %v600_v49, %v599_v42  ;;  %659 = vst [vmem:[%s397_s15] sm:$0xff] %v1034_v50  ;;  %v601_v34 = vadd.f32 %v593_v41, %v585_v51  ;;  %v586_v59 = vmul.f32 %v1148_v52, %v1616_v24 }
 0x15d   : > { %v1032_v60 = vpack.c.bf16 %v604_v54, %v603_v33  ;;  %661 = vst [vmem:[%s397_s15 + $0x10] sm:$0xff] %v1036_v55  ;;  %v605_v47 = vadd.f32 %v597_v45, %v589_v56  ;;  %v590_v61 = vmul.f32 %v1150_v57, %v1616_v24 }
 0x15e   : > { %631 = vst [vmem:[%s1705_s10] sm:$0xff] %v1030_v58  ;;  %v602_v19 = vadd.f32 %v594_v39, %v586_v59  ;;  %v1035_v62 = vpack.c.bf16 %v586_v59, %v585_v51 }
 0x15f   : > { %633 = vst [vmem:[%s1705_s10 + $0x10] sm:$0xff] %v1032_v60  ;;  %v606_v24 = vadd.f32 %v598_v53, %v590_v61  ;;  %v1037_v63 = vpack.c.bf16 %v590_v61, %v589_v56 }
 0x160   : > { %v1031_v0 = vpack.c.bf16 %v602_v19, %v601_v34  ;;  %660 = vst [vmem:[%s397_s15 + $0x8] sm:$0xff] %v1035_v62 }
 0x161   : > { %v1033_v1 = vpack.c.bf16 %v606_v24, %v605_v47  ;;  %662 = vst [vmem:[%s397_s15 + $0x18] sm:$0xff] %v1037_v63  ;;  %s1217_s15 = scalar_lea.vmem %s1216_s23, 1024 }
 0x162   : > { %632 = vst [vmem:[%s1705_s10 + $0x8] sm:$0xff] %v1031_v0  ;;  %p1219_p9 = scmp.lt.s32.totalorder %s1217_s15, %s1211_s12 }
 0x164   : > { %p1220_p11 = por %p1219_p9, %p1218_p10 }
 0x166   : > { %p1221_p1 = pnand %p1220_p11, %p1214_p7 }
 0x168   : > { %1224 = shalt.err (!%p1221_p1)
}
 0x169   : > { %s1225_s30 = scalar_lea.hbm %s1712_s3, 512  ;;  %s1229_s21 = scalar_lea.hbm %s1848_s6, 1024 }
 0x16a   : > { %p1226_p6 = scmp.ne.s32.totalorder %s1712_s3, %s1225_s30  ;;  %p1230_p4 = scmp.lt.u32.totalorder %s1712_s3, %s1848_s6 }
 0x16b   : > { %p1231_p8 = scmp.lt.u32.totalorder %s1229_s21, %s1225_s30  ;;  %p1233_p3 = scmp.lt.u32.totalorder %s1225_s30, %s1712_s3 }
 0x16c   : > { %p1227_p2 = pnand %p1226_p6, %p1877_p12 }
 0x16d   : > { %p1232_p0 = por %p1231_p8, %p1230_p4 }
 0x16e   : > { %p1228_p5 = pneg %p1227_p2 }
 0x16f   : > { %p1234_p13 = por %p1233_p3, %p1232_p0 }
 0x171   : > { %p1235_p7 = pnand %p1234_p13, %p1228_p5 }
 0x173   : > { %1238 = shalt.err (!%p1235_p7)
}
 0x174   : > { %s1365_s12 = smov 128   ;;  %s1366_s23 = smov 8   ;;  %634 = vst [vmem:[%s1705_s10 + $0x18] sm:$0xff] %v1033_v1 }
 0x175   : > { %1054 = dma.vmem_to_hbm [thread:$0]  (%p1877_p12), %s1716_s20, 512, %s1712_s3, %s1737_s27, %s1365_s12, %s1365_s12, %s1366_s23  }
 0x176   : > { %s1239_s15 = scalar_lea.vmem %s1724_s19, 512  ;;  %s1367_s30 = smov [#allocation10]  }
 0x177   : > { %p1240_p10 = scmp.ne.s32.totalorder %s1724_s19, %s1239_s15  ;;  %s1243_s13 = sshll.u32 %s1367_s30, 4  ;;  %s1244_s13 = int_to_ptr.vmem [resolvable:$false] %s1243_s13 }
 0x178   : > { %s1245_s9 = scalar_lea.vmem %s1244_s13, 1024  ;;  %p1246_p1 = scmp.lt.s32.totalorder %s1724_s19, %s1244_s13 }
 0x179   : > { %p1241_p9 = pnand %p1240_p10, %p1877_p12  ;;  %p1247_p6 = scmp.lt.s32.totalorder %s1245_s9, %s1239_s15 }
 0x17b   : > { %p1242_p11 = pneg %p1241_p9  ;;  %p1248_p2 = por %p1247_p6, %p1246_p1 }
 0x17d   : > { %p1249_p5 = pnand %p1248_p2, %p1242_p11 }
 0x17f   : > { %1252 = shalt.err (!%p1249_p5)
}
 0x180   : > { %s1253_s20 = scalar_lea.hbm %s1722_s26, 512  ;;  %s1257_s21 = scalar_lea.hbm %s1849_s7, 1024 }
 0x181   : > { %p1254_p4 = scmp.ne.s32.totalorder %s1722_s26, %s1253_s20  ;;  %p1258_p3 = scmp.lt.u32.totalorder %s1722_s26, %s1849_s7 }
 0x182   : > { %p1259_p13 = scmp.lt.u32.totalorder %s1257_s21, %s1253_s20  ;;  %p1261_p10 = scmp.lt.u32.totalorder %s1253_s20, %s1722_s26 }
 0x183   : > { %p1255_p8 = pnand %p1254_p4, %p1877_p12 }
 0x184   : > { %p1260_p7 = por %p1259_p13, %p1258_p3 }
 0x185   : > { %p1256_p0 = pneg %p1255_p8 }
 0x186   : > { %p1262_p9 = por %p1261_p10, %p1260_p7 }
 0x188   : > { %p1263_p11 = pnand %p1262_p9, %p1256_p0 }
 0x18a   : > { %1266 = shalt.err (!%p1263_p11)
}
 0x18b   : > { %1055 = dma.vmem_to_hbm [thread:$0]  (%p1877_p12), %s1724_s19, 512, %s1722_s26, %s1737_s27, %s1365_s12, %s1365_s12, %s1366_s23  }
 0x18c   : > { %s724_s15 = scalar_lea.sflag [#allocation4], %s1583_s11  ;;  %s1267_s30 = scalar_lea.vmem %s1732_s17, 512 }
 0x18d   : > { %p1268_p1 = scmp.ne.s32.totalorder %s1732_s17, %s1267_s30  ;;  %s1368_s13 = smov [#allocation7]  }
 0x18e   : > { %s1271_s9 = sshll.u32 %s1368_s13, 4  ;;  %s1272_s9 = int_to_ptr.vmem [resolvable:$false] %s1271_s9 }
 0x18f   : > { %p1269_p6 = pnand %p1268_p1, %p1877_p12  ;;  %s1273_s20 = scalar_lea.vmem %s1272_s9, 1024 }
 0x190   : > { %p1274_p5 = scmp.lt.s32.totalorder %s1732_s17, %s1272_s9  ;;  %p1275_p4 = scmp.lt.s32.totalorder %s1273_s20, %s1267_s30 }
 0x191   : > { %p1270_p2 = pneg %p1269_p6 }
 0x192   : > { %p1276_p8 = por %p1275_p4, %p1274_p5 }
 0x194   : > { %p1277_p0 = pnand %p1276_p8, %p1270_p2 }
 0x196   : > { %1280 = shalt.err (!%p1277_p0)
}
 0x197   : > { %s1281_s19 = scalar_lea.hbm %s1730_s22, 512  ;;  %s1285_s10 = scalar_lea.hbm %s1847_s5, 1024 }
 0x198   : > { %p1282_p3 = scmp.ne.s32.totalorder %s1730_s22, %s1281_s19  ;;  %p1286_p10 = scmp.lt.u32.totalorder %s1730_s22, %s1847_s5 }
 0x199   : > { %p1287_p9 = scmp.lt.u32.totalorder %s1285_s10, %s1281_s19  ;;  %p1289_p1 = scmp.lt.u32.totalorder %s1281_s19, %s1730_s22 }
 0x19a   : > { %p1283_p13 = pnand %p1282_p3, %p1877_p12 }
 0x19b   : > { %p1288_p11 = por %p1287_p9, %p1286_p10 }
 0x19c   : > { %p1284_p7 = pneg %p1283_p13 }
 0x19d   : > { %p1290_p6 = por %p1289_p1, %p1288_p11 }
 0x19f   : > { %p1291_p2 = pnand %p1290_p6, %p1284_p7 }
 0x1a1   : > { %1294 = shalt.err (!%p1291_p2)
}
 0x1a2   : > { %1053 = dma.vmem_to_hbm [thread:$0]  (%p1877_p12), %s1732_s17, 512, %s1730_s22, %s724_s15, %s1365_s12, %s1365_s12, %s1366_s23  }
 0x1a3 PF: > { %s800_s18 = sand.u32 1, %s1337_s24   ;;  %p1878_p5 = scmp.ne.s32.totalorder %s1865_s16, 0 }
 0x1a4   : > { %p1879_p4 = scmp.ge.s32.totalorder %s1357_s29, 2  ;;  %s801_s8 = scalar_lea.sflag [#allocation4], %s800_s18 }
 0x1a6   : > { %p1067_p8 = pnand %p1879_p4, %p1878_p5 }
 0x1a8   : > { %1328 = dma.done.wait (!%p1067_p8), %s801_s8, 512  }
 0x1a9   : > { %1330 = vsyncadd (!%p1067_p8), %s801_s8, 4294966784  ;;  %s1880_s14 = sadd.s32 4294967294, %s1357_s29  }
 0x1aa   : > { %s809_s30 = sand.u32 1, %s1880_s14  }
 0x1ab   : > { %s810_s13 = scalar_lea.sflag [#allocation9], %s809_s30 }
 0x1ac   : > { %1332 = dma.done.wait (!%p1067_p8), %s810_s13, 1024  }
 0x1ad   : > { %1334 = vsyncadd (!%p1067_p8), %s810_s13, 4294966272  ;;  %s30_s29 = sadd.s32 1, %s1357_s29   ;;  %s1881_s11 = sld [smem:[#allocation15_spill]] }
 0x1ae   : > { %p27_p12 = scmp.ge.s32.totalorder %s30_s29, 4   ;;  %s1882_s26 = sld [smem:[#allocation17_spill]] }
 0x1af   : > { %s1883_s17 = sld [smem:[#allocation16_spill]]  ;;  %s1884_s24 = smov %s1341_s25 }
 0x1b0   : > { %s1886_s27 = smov %s1353_s28  ;;  %29 = sbr.rel (!%p27_p12) target bundleno = 12 (0xc), region = 133 }
 0x1b3   : > { %s1885_s25 = smov %s1881_s11 }
 0x1b5   : > { %s1887_s28 = smov %s1883_s17 }
 0x1b7   :  { %824 = vsyncpa [#allocation3], 1 }
 0x1b8   :  { %826 = vsyncpa [#allocation3 + $0x1], 1 }
 0x1b9   :  { %827 = vsyncpa [#allocation6], 1 }
 0x1ba   :  { %829 = vsyncpa [#allocation6 + $0x1], 1 }
 0x1bb   :  { %830 = vsyncpa [#allocation4], 1 }
 0x1bc   :  { %832 = vsyncpa [#allocation4 + $0x1], 1 }
 0x1bd   :  { %833 = vsyncpa [#allocation9], 1 }
 0x1be   :  { %835 = vsyncpa [#allocation9 + $0x1], 1 }

</bundles_post_ra>
